<compile_context>
chip_gen: v7x
topology: tpu7x:2x2x1
jax: 0.10.0
libtpu: 0.0.40
codegen_flags: <defaults>
</compile_context>

<pallas_src>
import jax
import jax.numpy as jnp
from jax.experimental import pallas as pl
from jax.experimental.pallas import tpu as pltpu

NEG_SLOPE = 0.25
LN_EPS = 1e-5

# True feature counts and their lane-aligned (padded) sizes.
F1, F1P = 100, 128
F2, F2P = 250, 256
F_OUT = 512
F_IN = 9


def _round_up(n, m):
    return ((n + m - 1) // m) * m


def _leaky_relu(x):
    return jnp.where(x >= 0, x, NEG_SLOPE * x)


def _layer_norm_padded(h, true_n):
    """LayerNorm (no affine) over the first `true_n` lanes of a lane-padded tensor.

    Invariant (guaranteed by _prepare_params): lanes >= true_n of `h` are exactly
    zero, because the padded weight columns / bias lanes producing `h` are exactly
    zero and LeakyReLU(0) == 0.  Hence plain sums over all lanes equal the true-lane
    sums and no iota/compare/where masking is needed.  The padded lanes of the
    returned value are (-mu * rsqrt(var+eps)), which is harmless: they only ever
    multiply all-zero weight rows in the next Linear.
    Matches PyTorch LayerNorm: biased variance, eps inside rsqrt.
    """
    inv_n = 1.0 / float(true_n)
    mu = jnp.sum(h, axis=-1, keepdims=True) * inv_n
    ex2 = jnp.sum(h * h, axis=-1, keepdims=True) * inv_n
    var = ex2 - mu * mu
    return (h - mu) * jax.lax.rsqrt(var + LN_EPS)


def cosmicnet2_kernel(x_ref, w1_ref, b1_ref, w2_ref, b2_ref, w3_ref, b3_ref, o_ref):
    x = x_ref[...].astype(jnp.float32)

    # Linear(9 -> 100[pad 128]) + LeakyReLU + LayerNorm(100).  K=9 is <1% of the
    # total FLOPs, so this dot stays fp32.
    h = jnp.dot(x, w1_ref[...], preferred_element_type=jnp.float32) + b1_ref[...]
    h = _leaky_relu(h)
    h = _layer_norm_padded(h, F1)

    # Linear(100 -> 250[pad 256]) (LN affine pre-folded) + LeakyReLU + LayerNorm(250).
    # Cast the activation to the weight dtype (bf16 by default) so the big matmuls
    # run on the fast MXU path with fp32 accumulation.
    h = jnp.dot(h.astype(w2_ref.dtype), w2_ref[...],
                preferred_element_type=jnp.float32) + b2_ref[...]
    h = _leaky_relu(h)
    h = _layer_norm_padded(h, F2)

    # Linear(250 -> 512) (LN affine pre-folded).
    h = jnp.dot(h.astype(w3_ref.dtype), w3_ref[...],
                preferred_element_type=jnp.float32) + b3_ref[...]

    o_ref[...] = h.astype(o_ref.dtype)


def _prepare_params(params, matmul_dtype=jnp.bfloat16):
    """Fold LN affine into the next Linear, zero-pad feature dims to 128/256, and
    cast the two large weight matrices to `matmul_dtype`.

    IMPORTANT INVARIANT (relied on by _layer_norm_padded and the matmuls): every
    padded weight row/column and every padded bias lane must be EXACTLY zero, and
    the activation must satisfy act(0) == 0 (LeakyReLU does).  Do not change the
    padding values or the activation without revisiting _layer_norm_padded.
    Casting happens AFTER padding so the zeros stay exact.
    """
    (w1, b1, g1, be1, w2, b2, g2, be2, w3, b3) = params

    # Fold:  (xn * g + be) @ W + b  ==  xn @ (g[:,None]*W) + (b + be @ W)
    w2f = g1[:, None] * w2                     # (100, 250)
    b2f = b2 + be1 @ w2                        # (250,)
    w3f = g2[:, None] * w3                     # (250, 512)
    b3f = b3 + be2 @ w3                        # (512,)

    w1p = jnp.pad(w1, ((0, 0), (0, F1P - F1)))                               # (9, 128)   f32
    b1p = jnp.pad(b1, (0, F1P - F1))[None, :]                                # (1, 128)   f32
    w2p = jnp.pad(w2f, ((0, F1P - F1), (0, F2P - F2))).astype(matmul_dtype)  # (128, 256)
    b2p = jnp.pad(b2f, (0, F2P - F2))[None, :]                               # (1, 256)   f32
    w3p = jnp.pad(w3f, ((0, F2P - F2), (0, 0))).astype(matmul_dtype)         # (256, 512)
    b3p = b3f[None, :]                                                       # (1, 512)   f32
    return w1p, b1p, w2p, b2p, w3p, b3p


def cosmicnet2_forward(x, params, *, tm=2048, matmul_dtype=jnp.bfloat16):
    """x: (B, 9) float32.  Returns (B, 256, 2) float32."""
    B = x.shape[0]

    # Batch tile: sublane(8)-aligned.  Capped at ~half the batch so the parallel
    # grid has >=2 steps (v7x two-TensorCore split); never larger than the batch.
    half = _round_up(max(-(-B // 2), 1), 8)
    TM = max(8, min(_round_up(tm, 8), half, _round_up(B, 8)))
    grid = (pl.cdiv(B, TM),)   # ragged last tile is handled (masked) by Pallas

    param_args = _prepare_params(params, matmul_dtype)

    def const_spec(a):
        # Constant block index -> fetched once, VMEM-resident across all grid steps.
        return pl.BlockSpec(a.shape, lambda i: (0,) * a.ndim)

    # Rough VMEM budget: double-buffered IO tiles + intermediates + params, with
    # ~50% headroom + 8 MiB for compiler scratch.  Default TM=2048 requests ~34 MiB
    # (uses ~20 MiB) -- inside v7x's 64 MiB physical and v5e/v6e's 128 MiB.
    param_bytes = sum(int(a.size) * a.dtype.itemsize for a in param_args)
    tile_bytes = TM * (2 * (F_IN + F_OUT) * 4 + (F1P + F2P + F_OUT) * 4 + (F1P + F2P) * 2)
    vmem_limit = int(min(100 * 1024 * 1024, 1.5 * (tile_bytes + param_bytes) + (8 << 20)))

    cost = pl.CostEstimate(
        flops=2 * B * (F_IN * F1P + F1P * F2P + F2P * F_OUT),
        transcendentals=2 * B,                    # one rsqrt per row per LayerNorm
        bytes_accessed=B * (F_IN + F_OUT) * 4 + param_bytes,
    )

    out = pl.pallas_call(
        cosmicnet2_kernel,
        out_shape=jax.ShapeDtypeStruct((B, F_OUT), jnp.float32),
        grid=grid,
        in_specs=[pl.BlockSpec((TM, F_IN), lambda i: (i, 0))]
        + [const_spec(a) for a in param_args],
        out_specs=pl.BlockSpec((TM, F_OUT), lambda i: (i, 0)),
        compiler_params=pltpu.CompilerParams(
            dimension_semantics=("parallel",),
            vmem_limit_bytes=vmem_limit,
        ),
        cost_estimate=cost,
    )(x, *param_args)

    # (B, 512) -> (B, 256, 2): pure minor-dim split, no extra HBM traffic.
    return jnp.reshape(out, (-1, 256, 2))


def init_params(key):
    """Deterministic init. Linear mimics PyTorch default U(-1/sqrt(fan_in), ...).
    LayerNorm gamma/beta are made non-trivial so the affine-folding path is actually
    exercised by the self-test (PyTorch default would be gamma=1, beta=0)."""
    def linear(k, fan_in, fan_out):
        kw, kb = jax.random.split(k)
        bound = 1.0 / (fan_in ** 0.5)
        w = jax.random.uniform(kw, (fan_in, fan_out), jnp.float32, -bound, bound)
        b = jax.random.uniform(kb, (fan_out,), jnp.float32, -bound, bound)
        return w, b

    k1, k2, k3, k4, k5 = jax.random.split(key, 5)
    w1, b1 = linear(k1, F_IN, F1)
    w2, b2 = linear(k2, F1, F2)
    w3, b3 = linear(k3, F2, F_OUT)
    g1 = 1.0 + 0.1 * jax.random.normal(k4, (F1,), jnp.float32)
    be1 = 0.1 * jax.random.normal(jax.random.fold_in(k4, 1), (F1,), jnp.float32)
    g2 = 1.0 + 0.1 * jax.random.normal(k5, (F2,), jnp.float32)
    be2 = 0.1 * jax.random.normal(jax.random.fold_in(k5, 1), (F2,), jnp.float32)
    return (w1, b1, g1, be1, w2, b2, g2, be2, w3, b3)


def _ref_layer_norm(x, gamma, beta):
    mu = jnp.mean(x, axis=-1, keepdims=True)
    var = jnp.mean((x - mu) * (x - mu), axis=-1, keepdims=True)
    return (x - mu) * jax.lax.rsqrt(var + LN_EPS) * gamma + beta


def reference_forward(x, params):
    """Pure-JAX fp32 reference (unfolded, unpadded) mirroring the PyTorch module."""
    (w1, b1, g1, be1, w2, b2, g2, be2, w3, b3) = params
    h = x @ w1 + b1
    h = _leaky_relu(h)
    h = _ref_layer_norm(h, g1, be1)
    h = h @ w2 + b2
    h = _leaky_relu(h)
    h = _ref_layer_norm(h, g2, be2)
    h = h @ w3 + b3
    return jnp.reshape(h, (-1, 256, 2))


if __name__ == "__main__":
    key = jax.random.PRNGKey(0)
    kx, kp = jax.random.split(key)
    params = init_params(kp)

    # Single-tile batch, fp32 matmul path (matches the fp32 reference tightly).
    B = 8
    x = jax.random.normal(kx, (B, F_IN), jnp.float32)
    ref = reference_forward(x, params)
    out = jax.block_until_ready(cosmicnet2_forward(x, params, matmul_dtype=jnp.float32))
    assert out.shape == (B, 256, 2), out.shape
    assert jnp.allclose(out, ref, atol=1e-4, rtol=1e-4), "fp32 path mismatch (B=8)"

    # Default bf16 fast path (fp32 MXU accumulation); looser tolerance vs fp32 ref.
    out_bf = jax.block_until_ready(cosmicnet2_forward(x, params))
    assert out_bf.shape == (B, 256, 2), out_bf.shape
    assert jnp.allclose(out_bf, ref, atol=3e-2, rtol=3e-2), "bf16 path mismatch (B=8)"

    # Multi-step grid with a ragged last tile (B=300, TM=128 -> 3 steps), fp32 path.
    B2 = 300
    x2 = jax.random.normal(jax.random.PRNGKey(1), (B2, F_IN), jnp.float32)
    ref2 = reference_forward(x2, params)
    out2 = jax.block_until_ready(
        cosmicnet2_forward(x2, params, tm=128, matmul_dtype=jnp.float32))
    assert out2.shape == (B2, 256, 2), out2.shape
    assert jnp.allclose(out2, ref2, atol=1e-4, rtol=1e-4), "fp32 path mismatch (B=300)"

    # Default tile selection: TM capped to ~half the batch -> 2 parallel grid steps,
    # ragged last tile, bf16 matmuls.
    out2_bf = jax.block_until_ready(cosmicnet2_forward(x2, params))
    assert out2_bf.shape == (B2, 256, 2), out2_bf.shape
    assert jnp.allclose(out2_bf, ref2, atol=3e-2, rtol=3e-2), "bf16 path mismatch (B=300)"

    print("KERNEL_OK")
</pallas_src>

<mosaic_0001>
module attributes {stable_mosaic.version = 11 : i64} {
  func.func @cosmicnet2_kernel(%arg0: i32, %arg1: memref<8x9xf32, #tpu.memory_space<vmem>>, %arg2: memref<9x128xf32, #tpu.memory_space<vmem>>, %arg3: memref<1x128xf32, #tpu.memory_space<vmem>>, %arg4: memref<128x256xf32, #tpu.memory_space<vmem>>, %arg5: memref<1x256xf32, #tpu.memory_space<vmem>>, %arg6: memref<256x512xf32, #tpu.memory_space<vmem>>, %arg7: memref<1x512xf32, #tpu.memory_space<vmem>>, %arg8: memref<8x512xf32, #tpu.memory_space<vmem>>) attributes {dimension_semantics = [#tpu.dimension_semantics<parallel>], iteration_bounds = array<i64: 1>, scalar_prefetch = 0 : i64, scratch_operands = 0 : i64, tpu.core_type = #tpu.core_type<tc>, window_params = [{transform_indices = @transform_0, window_bounds = array<i64: 8, 9>}, {pipeline_mode = #tpu.pipeline_mode<synchronous>, transform_indices = @transform_1, window_bounds = array<i64: 9, 128>}, {pipeline_mode = #tpu.pipeline_mode<synchronous>, transform_indices = @transform_2, window_bounds = array<i64: 1, 128>}, {pipeline_mode = #tpu.pipeline_mode<synchronous>, transform_indices = @transform_3, window_bounds = array<i64: 128, 256>}, {pipeline_mode = #tpu.pipeline_mode<synchronous>, transform_indices = @transform_4, window_bounds = array<i64: 1, 256>}, {pipeline_mode = #tpu.pipeline_mode<synchronous>, transform_indices = @transform_5, window_bounds = array<i64: 256, 512>}, {pipeline_mode = #tpu.pipeline_mode<synchronous>, transform_indices = @transform_6, window_bounds = array<i64: 1, 512>}, {transform_indices = @transform_7, window_bounds = array<i64: 8, 512>}]} {
    %c0 = arith.constant 0 : index
    %c0_0 = arith.constant 0 : index
    %0 = vector.load %arg1[%c0, %c0_0] : memref<8x9xf32, #tpu.memory_space<vmem>>, vector<8x9xf32>
    %c0_1 = arith.constant 0 : index
    %c0_2 = arith.constant 0 : index
    %1 = vector.load %arg2[%c0_1, %c0_2] : memref<9x128xf32, #tpu.memory_space<vmem>>, vector<9x128xf32>
    %cst = arith.constant dense<0.000000e+00> : vector<8x128xf32>
    %2 = tpu.matmul %0, %1, %cst {dimension_numbers = #tpu.dot_dimension_numbers<[1], [0], [0], [1], [0, 0, 1, 1], [], []>} : vector<8x9xf32>, vector<9x128xf32>, vector<8x128xf32> -> vector<8x128xf32>
    %c0_3 = arith.constant 0 : index
    %c0_4 = arith.constant 0 : index
    %3 = vector.load %arg3[%c0_3, %c0_4] : memref<1x128xf32, #tpu.memory_space<vmem>>, vector<1x128xf32>
    %4 = vector.broadcast %3 : vector<1x128xf32> to vector<8x128xf32>
    %5 = arith.addf %2, %4 : vector<8x128xf32>
    %cst_5 = arith.constant 0.000000e+00 : f32
    %6 = vector.broadcast %cst_5 : f32 to vector<8x128xf32>
    %7 = arith.cmpf oge, %5, %6 : vector<8x128xf32>
    %cst_6 = arith.constant 2.500000e-01 : f32
    %8 = vector.broadcast %cst_6 : f32 to vector<8x128xf32>
    %9 = arith.mulf %8, %5 : vector<8x128xf32>
    %10 = arith.select %7, %5, %9 : vector<8x128xi1>, vector<8x128xf32>
    %cst_7 = arith.constant dense<0.000000e+00> : vector<8xf32>
    %11 = vector.multi_reduction <add>, %10, %cst_7 [1] : vector<8x128xf32> to vector<8xf32>
    %12 = vector.shape_cast %11 : vector<8xf32> to vector<8x1xf32>
    %cst_8 = arith.constant 0.00999999977 : f32
    %13 = vector.broadcast %cst_8 : f32 to vector<8x1xf32>
    %14 = arith.mulf %12, %13 : vector<8x1xf32>
    %15 = arith.mulf %10, %10 : vector<8x128xf32>
    %cst_9 = arith.constant dense<0.000000e+00> : vector<8xf32>
    %16 = vector.multi_reduction <add>, %15, %cst_9 [1] : vector<8x128xf32> to vector<8xf32>
    %17 = vector.shape_cast %16 : vector<8xf32> to vector<8x1xf32>
    %cst_10 = arith.constant 0.00999999977 : f32
    %18 = vector.broadcast %cst_10 : f32 to vector<8x1xf32>
    %19 = arith.mulf %17, %18 : vector<8x1xf32>
    %20 = arith.mulf %14, %14 : vector<8x1xf32>
    %21 = arith.subf %19, %20 : vector<8x1xf32>
    %22 = vector.broadcast %14 : vector<8x1xf32> to vector<8x128xf32>
    %23 = arith.subf %10, %22 : vector<8x128xf32>
    %cst_11 = arith.constant 9.99999974E-6 : f32
    %24 = vector.broadcast %cst_11 : f32 to vector<8x1xf32>
    %25 = arith.addf %21, %24 : vector<8x1xf32>
    %26 = math.rsqrt %25 : vector<8x1xf32>
    %27 = vector.broadcast %26 : vector<8x1xf32> to vector<8x128xf32>
    %28 = arith.mulf %23, %27 : vector<8x128xf32>
    %c0_12 = arith.constant 0 : index
    %c0_13 = arith.constant 0 : index
    %29 = vector.load %arg4[%c0_12, %c0_13] : memref<128x256xf32, #tpu.memory_space<vmem>>, vector<128x256xf32>
    %cst_14 = arith.constant dense<0.000000e+00> : vector<8x256xf32>
    %30 = tpu.matmul %28, %29, %cst_14 {dimension_numbers = #tpu.dot_dimension_numbers<[1], [0], [0], [1], [0, 0, 1, 1], [], []>} : vector<8x128xf32>, vector<128x256xf32>, vector<8x256xf32> -> vector<8x256xf32>
    %c0_15 = arith.constant 0 : index
    %c0_16 = arith.constant 0 : index
    %31 = vector.load %arg5[%c0_15, %c0_16] : memref<1x256xf32, #tpu.memory_space<vmem>>, vector<1x256xf32>
    %32 = vector.broadcast %31 : vector<1x256xf32> to vector<8x256xf32>
    %33 = arith.addf %30, %32 : vector<8x256xf32>
    %cst_17 = arith.constant 0.000000e+00 : f32
    %34 = vector.broadcast %cst_17 : f32 to vector<8x256xf32>
    %35 = arith.cmpf oge, %33, %34 : vector<8x256xf32>
    %cst_18 = arith.constant 2.500000e-01 : f32
    %36 = vector.broadcast %cst_18 : f32 to vector<8x256xf32>
    %37 = arith.mulf %36, %33 : vector<8x256xf32>
    %38 = arith.select %35, %33, %37 : vector<8x256xi1>, vector<8x256xf32>
    %cst_19 = arith.constant dense<0.000000e+00> : vector<8xf32>
    %39 = vector.multi_reduction <add>, %38, %cst_19 [1] : vector<8x256xf32> to vector<8xf32>
    %40 = vector.shape_cast %39 : vector<8xf32> to vector<8x1xf32>
    %cst_20 = arith.constant 4.000000e-03 : f32
    %41 = vector.broadcast %cst_20 : f32 to vector<8x1xf32>
    %42 = arith.mulf %40, %41 : vector<8x1xf32>
    %43 = arith.mulf %38, %38 : vector<8x256xf32>
    %cst_21 = arith.constant dense<0.000000e+00> : vector<8xf32>
    %44 = vector.multi_reduction <add>, %43, %cst_21 [1] : vector<8x256xf32> to vector<8xf32>
    %45 = vector.shape_cast %44 : vector<8xf32> to vector<8x1xf32>
    %cst_22 = arith.constant 4.000000e-03 : f32
    %46 = vector.broadcast %cst_22 : f32 to vector<8x1xf32>
    %47 = arith.mulf %45, %46 : vector<8x1xf32>
    %48 = arith.mulf %42, %42 : vector<8x1xf32>
    %49 = arith.subf %47, %48 : vector<8x1xf32>
    %50 = vector.broadcast %42 : vector<8x1xf32> to vector<8x256xf32>
    %51 = arith.subf %38, %50 : vector<8x256xf32>
    %cst_23 = arith.constant 9.99999974E-6 : f32
    %52 = vector.broadcast %cst_23 : f32 to vector<8x1xf32>
    %53 = arith.addf %49, %52 : vector<8x1xf32>
    %54 = math.rsqrt %53 : vector<8x1xf32>
    %55 = vector.broadcast %54 : vector<8x1xf32> to vector<8x256xf32>
    %56 = arith.mulf %51, %55 : vector<8x256xf32>
    %c0_24 = arith.constant 0 : index
    %c0_25 = arith.constant 0 : index
    %57 = vector.load %arg6[%c0_24, %c0_25] : memref<256x512xf32, #tpu.memory_space<vmem>>, vector<256x512xf32>
    %cst_26 = arith.constant dense<0.000000e+00> : vector<8x512xf32>
    %58 = tpu.matmul %56, %57, %cst_26 {dimension_numbers = #tpu.dot_dimension_numbers<[1], [0], [0], [1], [0, 0, 1, 1], [], []>} : vector<8x256xf32>, vector<256x512xf32>, vector<8x512xf32> -> vector<8x512xf32>
    %c0_27 = arith.constant 0 : index
    %c0_28 = arith.constant 0 : index
    %59 = vector.load %arg7[%c0_27, %c0_28] : memref<1x512xf32, #tpu.memory_space<vmem>>, vector<1x512xf32>
    %60 = vector.broadcast %59 : vector<1x512xf32> to vector<8x512xf32>
    %61 = arith.addf %58, %60 : vector<8x512xf32>
    %c0_29 = arith.constant 0 : index
    %c0_30 = arith.constant 0 : index
    %62 = vector.load %arg8[%c0_29, %c0_30] : memref<8x512xf32, #tpu.memory_space<vmem>>, vector<8x512xf32>
    tpu.vector_store %arg8[%c0_29, %c0_30], %61 {strides = array<i32>} : memref<8x512xf32, #tpu.memory_space<vmem>>, vector<8x512xf32>,
    return
  }
  func.func @transform_0(%arg0: i32) -> (i32, i32) {
    %c0_i32 = arith.constant 0 : i32
    %c0_i32_0 = arith.constant 0 : i32
    return %arg0, %c0_i32 : i32, i32
  }
  func.func @transform_1(%arg0: i32) -> (i32, i32) {
    %c0_i32 = arith.constant 0 : i32
    %c0_i32_0 = arith.constant 0 : i32
    %c0_i32_1 = arith.constant 0 : i32
    return %c0_i32, %c0_i32_0 : i32, i32
  }
  func.func @transform_2(%arg0: i32) -> (i32, i32) {
    %c0_i32 = arith.constant 0 : i32
    %c0_i32_0 = arith.constant 0 : i32
    %c0_i32_1 = arith.constant 0 : i32
    return %c0_i32, %c0_i32_0 : i32, i32
  }
  func.func @transform_3(%arg0: i32) -> (i32, i32) {
    %c0_i32 = arith.constant 0 : i32
    %c0_i32_0 = arith.constant 0 : i32
    %c0_i32_1 = arith.constant 0 : i32
    return %c0_i32, %c0_i32_0 : i32, i32
  }
  func.func @transform_4(%arg0: i32) -> (i32, i32) {
    %c0_i32 = arith.constant 0 : i32
    %c0_i32_0 = arith.constant 0 : i32
    %c0_i32_1 = arith.constant 0 : i32
    return %c0_i32, %c0_i32_0 : i32, i32
  }
  func.func @transform_5(%arg0: i32) -> (i32, i32) {
    %c0_i32 = arith.constant 0 : i32
    %c0_i32_0 = arith.constant 0 : i32
    %c0_i32_1 = arith.constant 0 : i32
    return %c0_i32, %c0_i32_0 : i32, i32
  }
  func.func @transform_6(%arg0: i32) -> (i32, i32) {
    %c0_i32 = arith.constant 0 : i32
    %c0_i32_0 = arith.constant 0 : i32
    %c0_i32_1 = arith.constant 0 : i32
    return %c0_i32, %c0_i32_0 : i32, i32
  }
  func.func @transform_7(%arg0: i32) -> (i32, i32) {
    %c0_i32 = arith.constant 0 : i32
    %c0_i32_0 = arith.constant 0 : i32
    return %arg0, %c0_i32 : i32, i32
  }
}

</mosaic_0001>

<bundles_post_ra>
// kernel: tpu_custom_call.1
= control target key start
LH: loop header
LB: loop body
LE: loop exit
PB: predicated region body
PF: predicated region fallthrough
CT: control target
= control target key end

     0   :  { %12 = vsyncpa [#allocation3], 0  ;;  %s1100_s0 = inlined_call_operand.hbm [shape: f32[8,9], index: 0, kind: input, shape index: {}]   ;;  %s1101_s1 = inlined_call_operand.hbm [shape: f32[9,128], index: 1, kind: input, shape index: {}]   ;;  %s1102_s2 = inlined_call_operand.vmem [shape: f32[1,128], index: 2, kind: input, shape index: {}]   ;;  %s1103_s3 = inlined_call_operand.hbm [shape: f32[128,256], index: 3, kind: input, shape index: {}]   ;;  %s1104_s4 = inlined_call_operand.vmem [shape: f32[1,256], index: 4, kind: input, shape index: {}]   ;;  %s1105_s5 = inlined_call_operand.hbm [shape: f32[256,512], index: 5, kind: input, shape index: {}]   ;;  %s1106_s6 = inlined_call_operand.vmem [shape: f32[1,512], index: 6, kind: input, shape index: {}]   ;;  %s1107_s7 = inlined_call_operand.hbm [shape: f32[8,512], index: 7, kind: output, shape index: {}]  }
   0x1   :  { %13 = vsyncpa [#allocation6], 0 }
   0x2   :  { %14 = vsyncpa [#allocation9], 0 }
   0x3   :  { %15 = vsyncpa [#allocation4], 0  ;;  %s950_s24 = smov [#allocation5]   ;;  %s832_s28 = scalar_lea.hbm %s1101_s1, 256 }
   0x4   :  { %s31_s25 = sshll.u32 %s950_s24, 4  ;;  %p833_p0 = scmp.ne.s32.totalorder %s1101_s1, %s832_s28  ;;  %s32_s25 = int_to_ptr.vmem [resolvable:$true] %s31_s25 }
   0x5   :  { %p836_p1 = scmp.lt.u32.totalorder %s832_s28, %s1101_s1 }
   0x7   :  { %p838_p2 = pnand %p836_p1, %p833_p0 }
   0x9   :  { %841 = shalt.err (!%p838_p2)
}
   0xa   :  { %s842_s10 = scalar_lea.vmem %s32_s25, 256  ;;  %p847_p4 = scmp.lt.s32.totalorder %s32_s25, %s32_s25 }
   0xb   :  { %p843_p3 = scmp.ne.s32.totalorder %s32_s25, %s842_s10  ;;  %p848_p5 = scmp.lt.s32.totalorder %s842_s10, %s842_s10 }
   0xd   :  { %p849_p6 = por %p848_p5, %p847_p4 }
   0xf   :  { %p850_p7 = pnand %p849_p6, %p843_p3 }
  0x11   :  { %853 = shalt.err (!%p850_p7)
}
  0x12   :  { %s951_s11 = smov 128   ;;  %s952_s12 = smov 8  }
  0x13   :  { %37 = dma.hbm_to_vmem [thread:$0]  %s1101_s1, 256, %s32_s25, [#allocation6], %s951_s11, %s951_s11, %s952_s12  }
  0x14   :  { %s953_s15 = smov [#allocation2]   ;;  %s954_s17 = smov [#allocation7]  }
  0x15   :  { %s22_s16 = sshll.u32 %s953_s15, 4  ;;  %s45_s18 = sshll.u32 %s954_s17, 4  ;;  %s23_s16 = int_to_ptr.vmem [resolvable:$true] %s22_s16  ;;  %s46_s18 = int_to_ptr.vmem [resolvable:$true] %s45_s18 }
  0x16   :  { %s854_s21 = scalar_lea.hbm %s1100_s0, 128 }
  0x17   :  { %p855_p8 = scmp.ne.s32.totalorder %s1100_s0, %s854_s21  ;;  %p858_p9 = scmp.lt.u32.totalorder %s854_s21, %s1100_s0 }
  0x19   :  { %p860_p10 = pnand %p858_p9, %p855_p8 }
  0x1b   :  { %863 = shalt.err (!%p860_p10)
}
  0x1c   :  { %s864_s1 = scalar_lea.vmem %s23_s16, 128  ;;  %p869_p12 = scmp.lt.s32.totalorder %s23_s16, %s23_s16 }
  0x1d   :  { %p865_p11 = scmp.ne.s32.totalorder %s23_s16, %s864_s1  ;;  %p870_p13 = scmp.lt.s32.totalorder %s864_s1, %s864_s1 }
  0x1f   :  { %p871_p0 = por %p870_p13, %p869_p12 }
  0x21   :  { %p872_p1 = pnand %p871_p0, %p865_p11 }
  0x23   :  { %875 = shalt.err (!%p872_p1)
}
  0x24   :  { %25 = dma.hbm_to_vmem [thread:$0]  %s1100_s0, 128, %s23_s16, [#allocation3]  }
  0x25   :  { %s876_s30 = scalar_lea.hbm %s1103_s3, 4096 }
  0x26   :  { %p877_p2 = scmp.ne.s32.totalorder %s1103_s3, %s876_s30  ;;  %p880_p3 = scmp.lt.u32.totalorder %s876_s30, %s1103_s3 }
  0x28   :  { %p882_p4 = pnand %p880_p3, %p877_p2 }
  0x2a   :  { %885 = shalt.err (!%p882_p4)
}
  0x2b   :  { %s886_s12 = scalar_lea.vmem %s46_s18, 4096  ;;  %p891_p6 = scmp.lt.s32.totalorder %s46_s18, %s46_s18 }
  0x2c   :  { %p887_p5 = scmp.ne.s32.totalorder %s46_s18, %s886_s12  ;;  %p892_p7 = scmp.lt.s32.totalorder %s886_s12, %s886_s12 }
  0x2e   :  { %p893_p8 = por %p892_p7, %p891_p6 }
  0x30   :  { %p894_p9 = pnand %p893_p8, %p887_p5 }
  0x32   :  { %897 = shalt.err (!%p894_p9)
}
  0x33   :  { %s955_s0 = smov 256   ;;  %s956_s13 = smov 16  }
  0x34   :  { %51 = dma.hbm_to_vmem [thread:$0]  %s1103_s3, 4096, %s46_s18, [#allocation6], %s955_s0, %s955_s0, %s956_s13  }
  0x35   :  { %s957_s16 = smov [#allocation8]   ;;  %s898_s21 = scalar_lea.hbm %s1105_s5, 16384 }
  0x36   :  { %s59_s17 = sshll.u32 %s957_s16, 4  ;;  %p899_p10 = scmp.ne.s32.totalorder %s1105_s5, %s898_s21  ;;  %s60_s17 = int_to_ptr.vmem [resolvable:$true] %s59_s17 }
  0x37   :  { %p902_p11 = scmp.lt.u32.totalorder %s898_s21, %s1105_s5 }
  0x39   :  { %p904_p12 = pnand %p902_p11, %p899_p10 }
  0x3b   :  { %907 = shalt.err (!%p904_p12)
}
  0x3c   :  { %s908_s1 = scalar_lea.vmem %s60_s17, 16384  ;;  %p913_p0 = scmp.lt.s32.totalorder %s60_s17, %s60_s17 }
  0x3d   :  { %p909_p13 = scmp.ne.s32.totalorder %s60_s17, %s908_s1  ;;  %p914_p1 = scmp.lt.s32.totalorder %s908_s1, %s908_s1 }
  0x3f   :  { %p915_p2 = por %p914_p1, %p913_p0 }
  0x41   :  { %p916_p3 = pnand %p915_p2, %p909_p13 }
  0x43   :  { %919 = shalt.err (!%p916_p3)
}
  0x44   :  { %s958_s3 = smov 512   ;;  %s959_s18 = smov 32  }
  0x45   :  { %65 = dma.hbm_to_vmem [thread:$0]  %s1105_s5, 16384, %s60_s17, [#allocation9], %s958_s3, %s958_s3, %s959_s18  }
  0x46   :  { %942 = dma.done.wait [#allocation3], 128  }
  0x47   :  { %943 = vsyncadd [#allocation3], 4294967168 }
  0x48   :  { %944 = dma.done.wait [#allocation6], 4352  }
  0x49   :  { %945 = vsyncadd [#allocation6], 4294962944 }
  0x4a   :  { %946 = dma.done.wait [#allocation9], 16384  }
  0x4b   :  { %947 = vsyncadd [#allocation9], 4294950912  ;;  %v960_v0 = vmov 0.0|0.0   ;;  %vm961_vm0 = vmmov 0   ;;  %v962_v1 = vmov 0.0   ;;  %vm94_vm1 = vcmask 1040384  }
  0x4c   :  { %649 = vmatprep.subr.bf16.mxu0 %v960_v0  ;;  %646 = vmatprep.mubr.msk.f32.mxu0 %vm961_vm0, %v962_v1  ;;  %v81_v2 = vld [vmem:[#allocation5] sm:$0xff]  ;;  %v82_v3 = vld [vmem:[#allocation5 + $0x8] sm:$0x1]  ;;  %vm963_vm2 = vmmov 1   ;;  %v80_v5 = vld [vmem:[#allocation2] sm:$0xff]  ;;  %vm90_vm4 = vcmask 72704  }
  0x4d   :  { %292 = vmatprep.mubr.f32.mxu1 %v962_v1  ;;  %vm651_vm3 = vmpackc.low %vm94_vm1, %vm963_vm2  ;;  %v650_v4 = vpack.c.bf16 %v82_v3, %v81_v2  ;;  %v185_v6 = vld [vmem:[#allocation7 + $0x8] sm:$0xff]  ;;  %v187_v7 = vld [vmem:[#allocation7 + $0x18] sm:$0xff]  ;;  %s964_s8 = smov [#allocation10]  }
  0x4e   :  { %v184_v8 = vld [vmem:[#allocation7] sm:$0xff]  ;;  %v653_v9 = vpack.c.bf16 %v187_v7, %v185_v6  ;;  %v186_v10 = vld [vmem:[#allocation7 + $0x10] sm:$0xff]  ;;  %v189_v11 = vld [vmem:[#allocation7 + $0x28] sm:$0xff]  ;;  %s625_s9 = sshll.u32 %s964_s8, 4  ;;  %s626_s9 = int_to_ptr.vmem [resolvable:$true] %s625_s9 }
  0x4f   :  { %652 = vmatpush3.bf16.msk.msra.mxu0 %vm651_vm3, %v650_v4  ;;  %v191_v12 = vld [vmem:[#allocation7 + $0x38] sm:$0xff]  ;;  %v655_v13 = vpack.c.bf16 %v186_v10, %v184_v8  ;;  %v188_v15 = vld [vmem:[#allocation7 + $0x20] sm:$0xff]  ;;  %v190_v16 = vld [vmem:[#allocation7 + $0x30] sm:$0xff]  ;;  %p925_p5 = scmp.lt.s32.totalorder %s626_s9, %s626_s9 }
  0x50   :  { %v657_v14 = vpack.c.bf16 %v191_v12, %v189_v11  ;;  %v193_v17 = vld [vmem:[#allocation7 + $0x48] sm:$0xff]  ;;  %654 = vmatprep.subr.bf16.mxu1 %v653_v9  ;;  %v195_v18 = vld [vmem:[#allocation7 + $0x58] sm:$0xff]  ;;  %v659_v19 = vpack.c.bf16 %v190_v16, %v188_v15  ;;  %v192_v28 = vld [vmem:[#allocation7 + $0x40] sm:$0xff] }
  0x51   :  { %656 = vmatpush1.bf16.msra.mxu1 %v655_v13  ;;  %v661_v20 = vpack.c.bf16 %v195_v18, %v193_v17  ;;  %v636_v21 = vld [vmem:[%s1102_s2] ss:$0 sm:$0xff]  ;;  %v194_v29 = vld [vmem:[#allocation7 + $0x50] sm:$0xff]  ;;  %v199_v32 = vld [vmem:[#allocation7 + $0x78] sm:$0xff] }
  0x52   :  { %647 = vmatmul.mubr.msk.f32.vlgmr.msra.gmra.mrb[0].mxu0 %vm90_vm4, %v80_v5  ;;  %658 = vmatprep.subr.bf16.mxu1 %v657_v14  ;;  %v663_v30 = vpack.c.bf16 %v194_v29, %v192_v28  ;;  %v197_v31 = vld [vmem:[#allocation7 + $0x68] sm:$0xff]  ;;  %v196_v34 = vld [vmem:[#allocation7 + $0x60] sm:$0xff]  ;;  %v198_v35 = vld [vmem:[#allocation7 + $0x70] sm:$0xff] }
  0x53   :  { %v665_v33 = vpack.c.bf16 %v199_v32, %v197_v31  ;;  %v667_v36 = vpack.c.bf16 %v198_v35, %v196_v34  ;;  %v201_v37 = vld [vmem:[#allocation7 + $0x88] sm:$0xff]  ;;  %v203_v38 = vld [vmem:[#allocation7 + $0x98] sm:$0xff]  ;;  %v200_v40 = vld [vmem:[#allocation7 + $0x80] sm:$0xff] }
  0x54   :  { %v669_v39 = vpack.c.bf16 %v203_v38, %v201_v37  ;;  %v202_v41 = vld [vmem:[#allocation7 + $0x90] sm:$0xff]  ;;  %v205_v43 = vld [vmem:[#allocation7 + $0xa8] sm:$0xff]  ;;  %v207_v44 = vld [vmem:[#allocation7 + $0xb8] sm:$0xff] }
  0x55   :  { %660 = vmatpush1.bf16.msra.mxu1 %v659_v19  ;;  %v671_v42 = vpack.c.bf16 %v202_v41, %v200_v40  ;;  %v673_v45 = vpack.c.bf16 %v207_v44, %v205_v43  ;;  %v204_v46 = vld [vmem:[#allocation7 + $0xa0] sm:$0xff]  ;;  %v206_v47 = vld [vmem:[#allocation7 + $0xb0] sm:$0xff]  ;;  %v209_v49 = vld [vmem:[#allocation7 + $0xc8] sm:$0xff] }
  0x56   :  { %662 = vmatprep.subr.bf16.mxu1 %v661_v20  ;;  %v675_v48 = vpack.c.bf16 %v206_v47, %v204_v46  ;;  %v211_v50 = vld [vmem:[#allocation7 + $0xd8] sm:$0xff]  ;;  %v208_v51 = vld [vmem:[#allocation7 + $0xc0] sm:$0xff]  ;;  %v210_v53 = vld [vmem:[#allocation7 + $0xd0] sm:$0xff] }
  0x57   :  { %v677_v52 = vpack.c.bf16 %v211_v50, %v209_v49  ;;  %v213_v54 = vld [vmem:[#allocation7 + $0xe8] sm:$0xff]  ;;  %v215_v55 = vld [vmem:[#allocation7 + $0xf8] sm:$0xff]  ;;  %v679_v56 = vpack.c.bf16 %v210_v53, %v208_v51  ;;  %v212_v58 = vld [vmem:[#allocation7 + $0xe0] sm:$0xff] }
  0x58   :  { %v681_v57 = vpack.c.bf16 %v215_v55, %v213_v54  ;;  %v214_v59 = vld [vmem:[#allocation7 + $0xf0] sm:$0xff]  ;;  %v324_v7 = vld [vmem:[#allocation8 + $0x8] sm:$0xff]  ;;  %v326_v9 = vld [vmem:[#allocation8 + $0x18] sm:$0xff] }
  0x59   :  { %664 = vmatpush1.bf16.msra.mxu1 %v663_v30  ;;  %v683_v60 = vpack.c.bf16 %v214_v59, %v212_v58  ;;  %v328_v8 = vld [vmem:[#allocation8 + $0x28] sm:$0xff]  ;;  %v330_v11 = vld [vmem:[#allocation8 + $0x38] sm:$0xff]  ;;  %v323_v12 = vld [vmem:[#allocation8] sm:$0xff] }
  0x5a   :  { %666 = vmatprep.subr.bf16.mxu1 %v665_v33  ;;  %v685_v10 = vpack.c.bf16 %v328_v8, %v324_v7  ;;  %v327_v13 = vld [vmem:[#allocation8 + $0x20] sm:$0xff]  ;;  %v749_v14 = vpack.c.bf16 %v330_v11, %v326_v9  ;;  %v325_v16 = vld [vmem:[#allocation8 + $0x10] sm:$0xff]  ;;  %v332_v18 = vld [vmem:[#allocation8 + $0x48] sm:$0xff] }
  0x5b   :  { %v687_v15 = vpack.c.bf16 %v327_v13, %v323_v12  ;;  %v329_v17 = vld [vmem:[#allocation8 + $0x30] sm:$0xff]  ;;  %v336_v20 = vld [vmem:[#allocation8 + $0x68] sm:$0xff]  ;;  %v342_v34 = vld [vmem:[#allocation8 + $0x98] sm:$0xff] }
  0x5c   :  { %686 = vmatprep.subr.bf16.mxu0 %v685_v10  ;;  %v751_v19 = vpack.c.bf16 %v329_v17, %v325_v16  ;;  %v337_v29 = vld [vmem:[#allocation8 + $0x70] sm:$0xff]  ;;  %v340_v30 = vld [vmem:[#allocation8 + $0x88] sm:$0xff]  ;;  %v346_v35 = vld [vmem:[#allocation8 + $0xb8] sm:$0xff] }
  0x5d   :  { %668 = vmatpush1.bf16.msra.mxu1 %v667_v36  ;;  %688 = vmatpush1.bf16.msra.mxu0 %v687_v15  ;;  %v344_v31 = vld [vmem:[#allocation8 + $0xa8] sm:$0xff]  ;;  %v339_v36 = vld [vmem:[#allocation8 + $0x80] sm:$0xff]  ;;  %v757_v37 = vpack.c.bf16 %v346_v35, %v342_v34  ;;  %v345_v40 = vld [vmem:[#allocation8 + $0xb0] sm:$0xff] }
  0x5e   :  { %670 = vmatprep.subr.bf16.mxu1 %v669_v39  ;;  %v693_v33 = vpack.c.bf16 %v344_v31, %v340_v30  ;;  %v343_v38 = vld [vmem:[#allocation8 + $0xa0] sm:$0xff]  ;;  %v341_v39 = vld [vmem:[#allocation8 + $0x90] sm:$0xff]  ;;  %v352_v43 = vld [vmem:[#allocation8 + $0xe8] sm:$0xff] }
  0x5f   :  { %v695_v41 = vpack.c.bf16 %v343_v38, %v339_v36  ;;  %v350_v44 = vld [vmem:[#allocation8 + $0xd8] sm:$0xff]  ;;  %v351_v49 = vld [vmem:[#allocation8 + $0xe0] sm:$0xff]  ;;  %v349_v51 = vld [vmem:[#allocation8 + $0xd0] sm:$0xff] }
  0x60   :  { %v354_v47 = vld [vmem:[#allocation8 + $0xf8] sm:$0xff]  ;;  %v356_v53 = vld [vmem:[#allocation8 + $0x108] sm:$0xff]  ;;  %v363_v8 = vld [vmem:[#allocation8 + $0x140] sm:$0xff] }
  0x61   :  { %672 = vmatpush1.bf16.msra.mxu1 %v671_v42  ;;  %v348_v42 = vld [vmem:[#allocation8 + $0xc8] sm:$0xff]  ;;  %v761_v50 = vpack.c.bf16 %v354_v47, %v350_v44  ;;  %v358_v55 = vld [vmem:[#allocation8 + $0x118] sm:$0xff]  ;;  %v367_v9 = vld [vmem:[#allocation8 + $0x160] sm:$0xff] }
  0x62   :  { %674 = vmatprep.subr.bf16.mxu1 %v673_v45  ;;  %v759_v45 = vpack.c.bf16 %v345_v40, %v341_v39  ;;  %v697_v46 = vpack.c.bf16 %v352_v43, %v348_v42  ;;  %v360_v54 = vld [vmem:[#allocation8 + $0x128] sm:$0xff]  ;;  %v365_v10 = vld [vmem:[#allocation8 + $0x150] sm:$0xff]  ;;  %v374_v15 = vld [vmem:[#allocation8 + $0x198] sm:$0xff]  ;;  %v707_v17 = vpack.c.bf16 %v367_v9, %v363_v8 }
  0x63   :  { %v701_v59 = vpack.c.bf16 %v360_v54, %v356_v53  ;;  %v369_v12 = vld [vmem:[#allocation8 + $0x170] sm:$0xff]  ;;  %v372_v13 = vld [vmem:[#allocation8 + $0x188] sm:$0xff]  ;;  %v378_v16 = vld [vmem:[#allocation8 + $0x1b8] sm:$0xff] }
  0x64   :  { %v381_v34 = vld [vmem:[#allocation8 + $0x1d0] sm:$0xff]  ;;  %v392_v38 = vld [vmem:[#allocation8 + $0x228] sm:$0xff]  ;;  %v390_v39 = vld [vmem:[#allocation8 + $0x218] sm:$0xff] }
  0x65   :  { %676 = vmatpush1.bf16.msra.mxu1 %v675_v48  ;;  %v347_v48 = vld [vmem:[#allocation8 + $0xc0] sm:$0xff]  ;;  %v385_v36 = vld [vmem:[#allocation8 + $0x1f0] sm:$0xff]  ;;  %v394_v40 = vld [vmem:[#allocation8 + $0x238] sm:$0xff] }
  0x66   :  { %678 = vmatprep.subr.bf16.mxu1 %v677_v52  ;;  %v353_v52 = vld [vmem:[#allocation8 + $0xf0] sm:$0xff]  ;;  %v779_v42 = vpack.c.bf16 %v385_v36, %v381_v34  ;;  %v387_v44 = vld [vmem:[#allocation8 + $0x200] sm:$0xff]  ;;  %v781_v47 = vpack.c.bf16 %v394_v40, %v390_v39  ;;  %v418_v34 = vld [vmem:[#allocation8 + $0x2f8] sm:$0xff] }
  0x67   :  { %v763_v58 = vpack.c.bf16 %v353_v52, %v349_v51  ;;  %v398_v51 = vld [vmem:[#allocation8 + $0x258] sm:$0xff]  ;;  %v415_v36 = vld [vmem:[#allocation8 + $0x2e0] sm:$0xff]  ;;  %v413_v39 = vld [vmem:[#allocation8 + $0x2d0] sm:$0xff] }
  0x68   :  { %v402_v52 = vld [vmem:[#allocation8 + $0x278] sm:$0xff]  ;;  %v417_v40 = vld [vmem:[#allocation8 + $0x2f0] sm:$0xff] }
  0x69   :  { %680 = vmatpush1.bf16.msra.mxu1 %v679_v56  ;;  %v362_v56 = vld [vmem:[#allocation8 + $0x138] sm:$0xff] }
  0x6a   :  { %682 = vmatprep.subr.bf16.mxu1 %v681_v57  ;;  %v699_v57 = vpack.c.bf16 %v351_v49, %v347_v48  ;;  %v393_v48 = vld [vmem:[#allocation8 + $0x230] sm:$0xff]  ;;  %v396_v49 = vld [vmem:[#allocation8 + $0x248] sm:$0xff] }
  0x6d   :  { %684 = vmatpush1.bf16.msra.mxu1 %v683_v60  ;;  %v355_v60 = vld [vmem:[#allocation8 + $0x100] sm:$0xff] }
  0x6e   :  { %750 = vmatprep.subr.bf16.mxu1 %v749_v14  ;;  %v376_v14 = vld [vmem:[#allocation8 + $0x1a8] sm:$0xff] }
 0x125   :  { %v164_v22 = vpop.f32.mrb[0].mxu0 }
 0x126   :  { %v165_v23 = vadd.f32 %v636_v21, %v164_v22  ;;  %v648_v24 = vpop.f32.mrb[1].mxu0  ;;  %v334_v21 = vld [vmem:[#allocation8 + $0x58] sm:$0xff] }
 0x127   :  { %v338_v22 = vld [vmem:[#allocation8 + $0x78] sm:$0xff] }
 0x128   :  { %v169_v25 = vmul.f32 0.25, %v165_v23  ;;  %vm168_vm5 = vcmp.ge.f32.partialorder %v165_v23, 0.0  ;;  %v753_v24 = vpack.c.bf16 %v338_v22, %v334_v21  ;;  %v375_v21 = vld [vmem:[#allocation8 + $0x1a0] sm:$0xff]  ;;  %v373_v22 = vld [vmem:[#allocation8 + $0x190] sm:$0xff] }
 0x12a   :  { %v170_v26 = vsel %vm168_vm5, %v165_v23, %v169_v25  ;;  %v689_v23 = vpack.c.bf16 %v336_v20, %v332_v18  ;;  %v331_v25 = vld [vmem:[#allocation8 + $0x40] sm:$0xff]  ;;  %v771_v18 = vpack.c.bf16 %v369_v12, %v365_v10 }
 0x12b   :  { %171 = vadd.xlane.f32.xlu0 %v170_v26  ;;  %v174_v27 = vmul.f32 %v170_v26, %v170_v26  ;;  %v371_v20 = vld [vmem:[#allocation8 + $0x180] sm:$0xff] }
 0x12c   :  { %690 = vmatprep.subr.bf16.mxu0 %v689_v23  ;;  %v773_v23 = vpack.c.bf16 %v378_v16, %v374_v15 }
 0x12f   :  { %175 = vadd.xlane.f32.xlu0 %v174_v27  ;;  %v333_v27 = vld [vmem:[#allocation8 + $0x50] sm:$0xff] }
 0x130   :  { %v755_v32 = vpack.c.bf16 %v337_v29, %v333_v27  ;;  %v382_v27 = vld [vmem:[#allocation8 + $0x1d8] sm:$0xff]  ;;  %v711_v29 = vpack.c.bf16 %v375_v21, %v371_v20 }
 0x131   :  { %v406_v20 = vld [vmem:[#allocation8 + $0x298] sm:$0xff] }
 0x1b8   :  { %v172_v61 = vpop.xlane.xlu0 %171 }
 0x1b9   :  { %v173_v62 = vmul.f32 0.01, %v172_v61  ;;  %v359_v61 = vld [vmem:[#allocation8 + $0x120] sm:$0xff] }
 0x1bb   :  { %v178_v0 = vmul.f32 %v173_v62, %v173_v62  ;;  %v180_v4 = vsub.f32 %v170_v26, %v173_v62  ;;  %v335_v26 = vld [vmem:[#allocation8 + $0x60] sm:$0xff]  ;;  %v357_v62 = vld [vmem:[#allocation8 + $0x110] sm:$0xff] }
 0x1bc   :  { %v176_v63 = vpop.xlane.xlu0 %175  ;;  %v691_v28 = vpack.c.bf16 %v335_v26, %v331_v25  ;;  %v380_v25 = vld [vmem:[#allocation8 + $0x1c8] sm:$0xff] }
 0x1bd   :  { %v177_v1 = vmul.f32 0.01, %v176_v63  ;;  %v765_v63 = vpack.c.bf16 %v362_v56, %v358_v55  ;;  %v384_v26 = vld [vmem:[#allocation8 + $0x1e8] sm:$0xff]  ;;  %v395_v56 = vld [vmem:[#allocation8 + $0x240] sm:$0xff] }
 0x1be   :  { %692 = vmatpush1.bf16.msra.mxu0 %v691_v28  ;;  %v386_v28 = vld [vmem:[#allocation8 + $0x1f8] sm:$0xff]  ;;  %v713_v31 = vpack.c.bf16 %v384_v26, %v380_v25 }
 0x1bf   :  { %v179_v2 = vsub.f32 %v177_v1, %v178_v0  ;;  %694 = vmatprep.subr.bf16.mxu0 %v693_v33  ;;  %v361_v0 = vld [vmem:[#allocation8 + $0x130] sm:$0xff]  ;;  %v364_v1 = vld [vmem:[#allocation8 + $0x148] sm:$0xff]  ;;  %v383_v33 = vld [vmem:[#allocation8 + $0x1e0] sm:$0xff]  ;;  %v777_v35 = vpack.c.bf16 %v386_v28, %v382_v27 }
 0x1c0   :  { %v405_v27 = vld [vmem:[#allocation8 + $0x290] sm:$0xff] }
 0x1c1   :  { %v181_v3 = vadd.f32 1e-05, %v179_v2  ;;  %v368_v2 = vld [vmem:[#allocation8 + $0x168] sm:$0xff]  ;;  %v409_v28 = vld [vmem:[#allocation8 + $0x2b0] sm:$0xff] }
 0x1c2   :  { %696 = vmatpush1.bf16.msra.mxu0 %v695_v41  ;;  %v705_v7 = vpack.c.bf16 %v368_v2, %v364_v1  ;;  %v216_v2 = vld [vmem:[%s1104_s4] sm:$0x3] }
 0x1c3   :  { %828 = vrsqrt.f32 %v181_v3  ;;  %698 = vmatprep.subr.bf16.mxu0 %v697_v46  ;;  %v366_v3 = vld [vmem:[#allocation8 + $0x158] sm:$0xff]  ;;  %v389_v46 = vld [vmem:[#allocation8 + $0x210] sm:$0xff] }
 0x1c4   :  { %v783_v54 = vpack.c.bf16 %v393_v48, %v389_v46  ;;  %v426_v46 = vld [vmem:[#allocation8 + $0x338] sm:$0xff]  ;;  %v423_v48 = vld [vmem:[#allocation8 + $0x320] sm:$0xff] }
 0x1c6   :  { %700 = vmatpush1.bf16.msra.mxu0 %v699_v57  ;;  %v399_v57 = vld [vmem:[#allocation8 + $0x260] sm:$0xff] }
 0x1c7   :  { %702 = vmatprep.subr.bf16.mxu0 %v701_v59  ;;  %v397_v59 = vld [vmem:[#allocation8 + $0x250] sm:$0xff] }
 0x1cd   :  { %v829_v5 = vpop.eup %828 }
 0x1ce   :  { %v183_v6 = vmul.f32 %v829_v5, %v180_v4  ;;  %v370_v4 = vld [vmem:[#allocation8 + $0x178] sm:$0xff]  ;;  %v703_v5 = vpack.c.bf16 %v359_v61, %v355_v60  ;;  %v401_v60 = vld [vmem:[#allocation8 + $0x270] sm:$0xff]  ;;  %v723_v61 = vpack.c.bf16 %v399_v57, %v395_v56 }
 0x1cf   :  { %v769_v11 = vpack.c.bf16 %v370_v4, %v366_v3  ;;  %v430_v56 = vld [vmem:[#allocation8 + $0x358] sm:$0xff] }
 0x1d0   :  { %293 = vmatmul.mubr.f32.vlgmr.msra.gmra.mrb[0].mxu1 %v183_v6  ;;  %v767_v6 = vpack.c.bf16 %v361_v0, %v357_v62  ;;  %704 = vmatpush1.bf16.msra.mxu0 %v703_v5  ;;  %v787_v62 = vpack.c.bf16 %v401_v60, %v397_v59  ;;  %v427_v59 = vld [vmem:[#allocation8 + $0x340] sm:$0xff] }
 0x1d1   :  { %752 = vmatpush1.bf16.msra.mxu1 %v751_v19  ;;  %706 = vmatprep.subr.bf16.mxu0 %v705_v7  ;;  %v709_v19 = vpack.c.bf16 %v376_v14, %v372_v13  ;;  %v431_v60 = vld [vmem:[#allocation8 + $0x360] sm:$0xff] }
 0x1d2   :  { %754 = vmatprep.subr.bf16.mxu1 %v753_v24  ;;  %v377_v24 = vld [vmem:[#allocation8 + $0x1b0] sm:$0xff] }
 0x1d3   :  { %v775_v30 = vpack.c.bf16 %v377_v24, %v373_v22  ;;  %v410_v22 = vld [vmem:[#allocation8 + $0x2b8] sm:$0xff]  ;;  %v407_v24 = vld [vmem:[#allocation8 + $0x2a0] sm:$0xff] }
 0x1d4   :  { %708 = vmatpush1.bf16.msra.mxu0 %v707_v17  ;;  %v789_v25 = vpack.c.bf16 %v410_v22, %v406_v20  ;;  %v446_v22 = vld [vmem:[#allocation8 + $0x3d8] sm:$0xff] }
 0x1d5   :  { %756 = vmatpush1.bf16.msra.mxu1 %v755_v32  ;;  %710 = vmatprep.subr.bf16.mxu0 %v709_v19  ;;  %v379_v32 = vld [vmem:[#allocation8 + $0x1c0] sm:$0xff]  ;;  %v408_v19 = vld [vmem:[#allocation8 + $0x2a8] sm:$0xff] }
 0x1d6   :  { %758 = vmatprep.subr.bf16.mxu1 %v757_v37  ;;  %v388_v37 = vld [vmem:[#allocation8 + $0x208] sm:$0xff]  ;;  %v715_v41 = vpack.c.bf16 %v383_v33, %v379_v32  ;;  %v414_v32 = vld [vmem:[#allocation8 + $0x2d8] sm:$0xff] }
 0x1d7   :  { %v717_v43 = vpack.c.bf16 %v392_v38, %v388_v37  ;;  %v793_v37 = vpack.c.bf16 %v418_v34, %v414_v32 }
 0x1d8   :  { %712 = vmatpush1.bf16.msra.mxu0 %v711_v29  ;;  %v791_v29 = vpack.c.bf16 %v409_v28, %v405_v27  ;;  %v445_v27 = vld [vmem:[#allocation8 + $0x3d0] sm:$0xff] }
 0x1d9   :  { %760 = vmatpush1.bf16.msra.mxu1 %v759_v45  ;;  %714 = vmatprep.subr.bf16.mxu0 %v713_v31  ;;  %v391_v45 = vld [vmem:[#allocation8 + $0x220] sm:$0xff]  ;;  %v416_v31 = vld [vmem:[#allocation8 + $0x2e8] sm:$0xff]  ;;  %v449_v28 = vld [vmem:[#allocation8 + $0x3f0] sm:$0xff] }
 0x1da   :  { %762 = vmatprep.subr.bf16.mxu1 %v761_v50  ;;  %v400_v50 = vld [vmem:[#allocation8 + $0x268] sm:$0xff]  ;;  %v719_v53 = vpack.c.bf16 %v391_v45, %v387_v44  ;;  %v422_v44 = vld [vmem:[#allocation8 + $0x318] sm:$0xff] }
 0x1db   :  { %v721_v55 = vpack.c.bf16 %v400_v50, %v396_v49  ;;  %v797_v49 = vpack.c.bf16 %v426_v46, %v422_v44  ;;  %v451_v44 = vld [vmem:[%s1106_s6] sm:$0xf]  ;;  %s920_s6 = scalar_lea.vmem %s626_s9, 512 }
 0x1dc   :  { %716 = vmatpush1.bf16.msra.mxu0 %v715_v41  ;;  %v795_v41 = vpack.c.bf16 %v417_v40, %v413_v39  ;;  %p921_p4 = scmp.ne.s32.totalorder %s626_s9, %s920_s6  ;;  %p926_p6 = scmp.lt.s32.totalorder %s920_s6, %s920_s6 }
 0x1dd   :  { %764 = vmatpush1.bf16.msra.mxu1 %v763_v58  ;;  %718 = vmatprep.subr.bf16.mxu0 %v717_v43  ;;  %v785_v58 = vpack.c.bf16 %v402_v52, %v398_v51  ;;  %v424_v43 = vld [vmem:[#allocation8 + $0x328] sm:$0xff]  ;;  %v421_v51 = vld [vmem:[#allocation8 + $0x310] sm:$0xff] }
 0x1de   :  { %766 = vmatprep.subr.bf16.mxu1 %v765_v63  ;;  %v218_v63 = vlaneseq  ;;  %v425_v52 = vld [vmem:[#allocation8 + $0x330] sm:$0xff]  ;;  %p927_p7 = por %p926_p6, %p925_p5 }
 0x1e0   :  { %720 = vmatpush1.bf16.msra.mxu0 %v719_v53  ;;  %v1056_v0 = vshrl.u32 %v218_v63, 7  ;;  %v799_v53 = vpack.c.bf16 %v425_v52, %v421_v51  ;;  %v429_v63 = vld [vmem:[#allocation8 + $0x350] sm:$0xff]  ;;  %p928_p8 = pnand %p927_p7, %p921_p4 }
 0x1e1   :  { %768 = vmatpush1.bf16.msra.mxu1 %v767_v6  ;;  %722 = vmatprep.subr.bf16.mxu0 %v721_v55  ;;  %v432_v55 = vld [vmem:[#allocation8 + $0x368] sm:$0xff] }
 0x1e2   :  { %770 = vmatprep.subr.bf16.mxu1 %v769_v11  ;;  %v220_v1 = vsub.s32 0, %v1056_v0  ;;  %v224_v3 = vsub.s32 1, %v1056_v0 }
 0x1e4   :  { %724 = vmatpush1.bf16.msra.mxu0 %v723_v61  ;;  %v221_v4 = vrot.slane %v216_v2, %v220_v1  ;;  %v225_v5 = vrot.slane %v216_v2, %v224_v3  ;;  %v433_v2 = vld [vmem:[#allocation8 + $0x370] sm:$0xff] }
 0x1e5   :  { %772 = vmatpush1.bf16.msra.mxu1 %v771_v18  ;;  %v404_v18 = vld [vmem:[#allocation8 + $0x288] sm:$0xff] }
 0x1e6   :  { %774 = vmatprep.subr.bf16.mxu1 %v773_v23  ;;  %v725_v21 = vpack.c.bf16 %v408_v19, %v404_v18  ;;  %v403_v23 = vld [vmem:[#allocation8 + $0x280] sm:$0xff]  ;;  %v444_v18 = vld [vmem:[#allocation8 + $0x3c8] sm:$0xff] }
 0x1e7   :  { %v727_v26 = vpack.c.bf16 %v407_v24, %v403_v23  ;;  %v448_v19 = vld [vmem:[#allocation8 + $0x3e8] sm:$0xff]  ;;  %v450_v23 = vld [vmem:[#allocation8 + $0x3f8] sm:$0xff]  ;;  %v443_v24 = vld [vmem:[#allocation8 + $0x3c0] sm:$0xff] }
 0x1e8   :  { %726 = vmatprep.subr.bf16.mxu0 %v725_v21  ;;  %v745_v21 = vpack.c.bf16 %v448_v19, %v444_v18 }
 0x1e9   :  { %776 = vmatpush1.bf16.msra.mxu1 %v775_v30  ;;  %728 = vmatpush1.bf16.msra.mxu0 %v727_v26  ;;  %v412_v30 = vld [vmem:[#allocation8 + $0x2c8] sm:$0xff]  ;;  %v447_v26 = vld [vmem:[#allocation8 + $0x3e0] sm:$0xff] }
 0x1ea   :  { %778 = vmatprep.subr.bf16.mxu1 %v777_v35  ;;  %v729_v33 = vpack.c.bf16 %v416_v31, %v412_v30  ;;  %v411_v35 = vld [vmem:[#allocation8 + $0x2c0] sm:$0xff]  ;;  %v811_v30 = vpack.c.bf16 %v449_v28, %v445_v27 }
 0x1eb   :  { %v731_v38 = vpack.c.bf16 %v415_v36, %v411_v35 }
 0x1ec   :  { %730 = vmatprep.subr.bf16.mxu0 %v729_v33 }
 0x1ed   :  { %780 = vmatpush1.bf16.msra.mxu1 %v779_v42  ;;  %732 = vmatpush1.bf16.msra.mxu0 %v731_v38  ;;  %v420_v42 = vld [vmem:[#allocation8 + $0x308] sm:$0xff] }
 0x1ee   :  { %782 = vmatprep.subr.bf16.mxu1 %v781_v47  ;;  %v733_v45 = vpack.c.bf16 %v424_v43, %v420_v42  ;;  %v419_v47 = vld [vmem:[#allocation8 + $0x300] sm:$0xff]  ;;  %v463_v43 = vsub.s32 2, %v1056_v0 }
 0x1ef   :  { %v735_v50 = vpack.c.bf16 %v423_v48, %v419_v47 }
 0x1f0   :  { %734 = vmatprep.subr.bf16.mxu0 %v733_v45  ;;  %v467_v45 = vsub.s32 3, %v1056_v0  ;;  %v464_v46 = vrot.slane %v451_v44, %v463_v43 }
 0x1f1   :  { %784 = vmatpush1.bf16.msra.mxu1 %v783_v54  ;;  %736 = vmatpush1.bf16.msra.mxu0 %v735_v50  ;;  %v428_v54 = vld [vmem:[#allocation8 + $0x348] sm:$0xff] }
 0x1f2   :  { %786 = vmatprep.subr.bf16.mxu1 %v785_v58  ;;  %v737_v57 = vpack.c.bf16 %v432_v55, %v428_v54  ;;  %v434_v58 = vld [vmem:[#allocation8 + $0x378] sm:$0xff]  ;;  %v468_v47 = vrot.slane %v451_v44, %v467_v45 }
 0x1f3   :  { %v801_v61 = vpack.c.bf16 %v434_v58, %v430_v56 }
 0x1f4   :  { %738 = vmatprep.subr.bf16.mxu0 %v737_v57 }
 0x1f5   :  { %788 = vmatpush1.bf16.msra.mxu1 %v787_v62  ;;  %v739_v62 = vpack.c.bf16 %v431_v60, %v427_v59 }
 0x1f6   :  { %790 = vmatprep.subr.bf16.mxu1 %v789_v25  ;;  %v809_v25 = vpack.c.bf16 %v450_v23, %v446_v22 }
 0x1f7   :  { %740 = vmatpush1.bf16.msra.mxu0 %v739_v62 }
 0x1f9   :  { %792 = vmatpush1.bf16.msra.mxu1 %v791_v29  ;;  %v747_v29 = vpack.c.bf16 %v447_v26, %v443_v24 }
 0x1fa   :  { %794 = vmatprep.subr.bf16.mxu1 %v793_v37 }
 0x1fd   :  { %796 = vmatpush1.bf16.msra.mxu1 %v795_v41 }
 0x1fe   :  { %798 = vmatprep.subr.bf16.mxu1 %v797_v49 }
 0x201   :  { %800 = vmatpush1.bf16.msra.mxu1 %v799_v53 }
 0x202   :  { %802 = vmatprep.subr.bf16.mxu1 %v801_v61 }
 0x2a3   :  { %v294_v6 = vpop.f32.mrb[0].mxu1 }
 0x2a4   :  { %v295_v7 = vadd.f32 %v294_v6, %v221_v4  ;;  %v296_v8 = vpop.f32.mrb[1].mxu1  ;;  %v436_v4 = vld [vmem:[#allocation8 + $0x388] sm:$0xff] }
 0x2a5   :  { %v297_v9 = vadd.f32 %v296_v8, %v225_v5  ;;  %v803_v5 = vpack.c.bf16 %v433_v2, %v429_v63  ;;  %v440_v6 = vld [vmem:[#allocation8 + $0x3a8] sm:$0xff]  ;;  %v442_v8 = vld [vmem:[#allocation8 + $0x3b8] sm:$0xff] }
 0x2a6   :  { %v301_v10 = vmul.f32 0.25, %v295_v7  ;;  %vm299_vm6 = vcmp.ge.f32.partialorder %v295_v7, 0.0 }
 0x2a7   :  { %v302_v11 = vmul.f32 0.25, %v297_v9  ;;  %vm300_vm7 = vcmp.ge.f32.partialorder %v297_v9, 0.0  ;;  %804 = vmatpush1.bf16.msra.mxu1 %v803_v5 }
 0x2a8   :  { %v1067_v12 = vsel %vm299_vm6, %v295_v7, %v301_v10  ;;  %v438_v7 = vld [vmem:[#allocation8 + $0x398] sm:$0xff] }
 0x2a9   :  { %v1069_v13 = vsel %vm300_vm7, %v297_v9, %v302_v11  ;;  %v309_v15 = vmul.f32 %v1067_v12, %v1067_v12  ;;  %v741_v9 = vpack.c.bf16 %v440_v6, %v436_v4  ;;  %v805_v10 = vpack.c.bf16 %v442_v8, %v438_v7  ;;  %v435_v11 = vld [vmem:[#allocation8 + $0x380] sm:$0xff] }
 0x2aa   :  { %v305_v14 = vadd.f32 %v1069_v13, %v1067_v12  ;;  %v310_v16 = vmul.f32 %v1069_v13, %v1069_v13 }
 0x2ab   :  { %742 = vmatprep.subr.bf16.mxu0 %v741_v9  ;;  %806 = vmatprep.subr.bf16.mxu1 %v805_v10 }
 0x2ac   :  { %306 = vadd.xlane.f32.xlu1 %v305_v14  ;;  %v311_v17 = vadd.f32 %v310_v16, %v309_v15  ;;  %v439_v14 = vld [vmem:[#allocation8 + $0x3a0] sm:$0xff]  ;;  %v437_v15 = vld [vmem:[#allocation8 + $0x390] sm:$0xff] }
 0x2ad   :  { %v743_v16 = vpack.c.bf16 %v439_v14, %v435_v11 }
 0x2af   :  { %744 = vmatpush1.bf16.msra.mxu0 %v743_v16 }
 0x2b0   :  { %312 = vadd.xlane.f32.xlu1 %v311_v17  ;;  %v441_v17 = vld [vmem:[#allocation8 + $0x3b0] sm:$0xff]  ;;  %746 = vmatprep.subr.bf16.mxu0 %v745_v21 }
 0x2b1   :  { %v807_v20 = vpack.c.bf16 %v441_v17, %v437_v15 }
 0x2b3   :  { %808 = vmatpush1.bf16.msra.mxu1 %v807_v20  ;;  %748 = vmatpush1.bf16.msra.mxu0 %v747_v29 }
 0x2b4   :  { %810 = vmatprep.subr.bf16.mxu1 %v809_v25 }
 0x2b7   :  { %812 = vmatpush1.bf16.msra.mxu1 %v811_v30 }
 0x339   :  { %v307_v31 = vpop.xlane.xlu1 %306 }
 0x33a   :  { %v308_v32 = vmul.f32 0.004, %v307_v31 }
 0x33c   :  { %v315_v34 = vmul.f32 %v308_v32, %v308_v32  ;;  %v317_v38 = vsub.f32 %v1067_v12, %v308_v32  ;;  %v318_v39 = vsub.f32 %v1069_v13, %v308_v32  ;;  %v456_v12 = vrot.slane %v451_v44, %v220_v1 }
 0x33d   :  { %v313_v33 = vpop.xlane.xlu1 %312  ;;  %v460_v13 = vrot.slane %v451_v44, %v224_v3 }
 0x33e   :  { %v314_v35 = vmul.f32 0.004, %v313_v33 }
 0x340   :  { %v316_v36 = vsub.f32 %v314_v35, %v315_v34 }
 0x342   :  { %v319_v37 = vadd.f32 1e-05, %v316_v36 }
 0x344   :  { %830 = vrsqrt.f32 %v319_v37 }
 0x34e   :  { %v831_v40 = vpop.eup %830 }
 0x34f   :  { %v322_v41 = vmul.f32 %v831_v40, %v318_v39  ;;  %v321_v42 = vmul.f32 %v831_v40, %v317_v38 }
 0x351   :  { %537 = vmatprep.mubr.f32.mxu0 %v322_v41  ;;  %608 = vmatprep.mubr.f32.mxu1 %v322_v41 }
 0x352   :  { %538 = vmatmul.mubr.f32.vlgmr.msra.gmra.mrb[2].mxu0 %v321_v42  ;;  %609 = vmatmul.mubr.f32.vlgmr.msra.gmra.mrb[2].mxu1 %v321_v42 }
 0x425   :  { %v539_v48 = vpop.f32.mrb[2].mxu0  ;;  %v610_v49 = vpop.f32.mrb[2].mxu1 }
 0x426   :  { %v540_v50 = vadd.f32 %v539_v48, %v456_v12  ;;  %v611_v51 = vadd.f32 %v610_v49, %v464_v46  ;;  %v541_v52 = vpop.f32.mrb[3].mxu0  ;;  %v612_v53 = vpop.f32.mrb[3].mxu1 }
 0x427   :  { %v542_v54 = vadd.f32 %v541_v52, %v460_v13  ;;  %v613_v55 = vadd.f32 %v612_v53, %v468_v47 }
 0x428   :  { %615 = vst [vmem:[#allocation10] sm:$0xff] %v540_v50  ;;  %617 = vst [vmem:[#allocation10 + $0x10] sm:$0xff] %v611_v51 }
 0x429   :  { %616 = vst [vmem:[#allocation10 + $0x8] sm:$0xff] %v542_v54  ;;  %618 = vst [vmem:[#allocation10 + $0x18] sm:$0xff] %v613_v55 }
 0x42a   :  { %931 = shalt.err (!%p928_p8)
}
 0x42b   :  { %s932_s12 = scalar_lea.hbm %s1107_s7, 512 }
 0x42c   :  { %p933_p9 = scmp.ne.s32.totalorder %s1107_s7, %s932_s12  ;;  %p936_p10 = scmp.lt.u32.totalorder %s932_s12, %s1107_s7 }
 0x42e   :  { %p938_p11 = pnand %p936_p10, %p933_p9 }
 0x430   :  { %941 = shalt.err (!%p938_p11)
}
 0x431   :  { %628 = dma.vmem_to_hbm [thread:$0]  %s626_s9, 512, %s1107_s7, [#allocation4]  }
 0x432   :  { %948 = dma.done.wait [#allocation4], 512  }
 0x433   :  { %949 = vsyncadd [#allocation4], 4294966784 }
 0x434   :  { %632 = vsyncpa [#allocation3], 1 }
 0x435   :  { %633 = vsyncpa [#allocation6], 1 }
 0x436   :  { %634 = vsyncpa [#allocation9], 1 }
 0x437   :  { %635 = vsyncpa [#allocation4], 1 }

</bundles_post_ra>
